<compile_context>
chip_gen: v5e
topology: v5e:2x2
jax: 0.10.0
libtpu: 0.0.40
codegen_flags: <defaults>
</compile_context>

<pallas_src>
import functools

import jax
import jax.numpy as jnp
from jax import lax
from jax.experimental import pallas as pl
from jax.experimental.pallas import tpu as pltpu


_LANE = 128
_SUBLANE = 8
_MAX_TILE_D = 4096            # single feature tile up to this many lanes
_MIN_TILE_D = 512             # below this, prefer a masked non-dividing tile
_FALLBACK_TILE_D = 2048
_MAX_TILE_ROWS = 1024
# 2 inputs x 2 pipeline buffers x (tile_rows * tile_d * itemsize) <= budget.
# Kept at 24 MiB so it stays well inside v7x's 64 MiB VMEM (per-gen review).
_VMEM_INPUT_BUDGET = 24 * 1024 * 1024
# Keep each f32 elementwise intermediate (res, res^2, quantized ints) modest.
_F32_TILE_CAP = 6 * 1024 * 1024


def _round_up(x, m):
    return (x + m - 1) // m * m


def _choose_tile_d(D):
    """Feature-axis tile.

    * D <= _MAX_TILE_D: tile the full feature dim (block equals the array dim,
      always layout-legal; single feature step, no masking, no padding).
    * else: largest multiple-of-128 divisor of round_up(D, 128) that fits
      (no padded HBM traffic); masked fixed tile only as a last resort.
    """
    if D <= _MAX_TILE_D:
        return D
    d_pad = _round_up(D, _LANE)
    groups = d_pad // _LANE
    max_groups = _MAX_TILE_D // _LANE
    best = 1
    for g in range(max_groups, 0, -1):
        if groups % g == 0:
            best = g
            break
    tile_d = best * _LANE
    if tile_d < _MIN_TILE_D:
        # No reasonable divisor; ragged tail is masked in-kernel.
        tile_d = _FALLBACK_TILE_D
    return tile_d


def _choose_tile_rows(N, tile_d, itemsize, max_tile_rows):
    # Input double-buffer budget, sized from the actual input dtype.
    rows = _VMEM_INPUT_BUDGET // (2 * 2 * itemsize * tile_d)
    # Cap f32 intermediates inside the kernel body.
    rows = min(rows, _F32_TILE_CAP // (4 * tile_d))
    rows = min(rows, max_tile_rows)
    # v7x megacore: keep >=2 (ideally 4) row blocks so both TCs stream HBM.
    if N >= 4 * _SUBLANE:
        rows = min(rows, _round_up((N + 3) // 4, _SUBLANE))
    elif N > _SUBLANE:
        rows = min(rows, _round_up((N + 1) // 2, _SUBLANE))
    rows = max(_SUBLANE, (rows // _SUBLANE) * _SUBLANE)
    rows = min(rows, _round_up(N, _SUBLANE))
    return rows


def _mse_loss_kernel(hat_ref, obs_ref, out_ref, acc_ref, *,
                     is_proprio, feat_dim, tile_d, needs_col_mask,
                     single_feat_step):
    k = pl.program_id(1)

    hat = hat_ref[...].astype(jnp.float32)
    obs = obs_ref[...].astype(jnp.float32)
    res = hat - obs
    if not is_proprio:
        # Emulate torch's (x * 255).to(torch.uint8): truncation toward zero,
        # with & 255 so out-of-[0,1] predictions keep the uint8 wrap
        # semantics.  Quantization is done in f32 regardless of input dtype.
        q_obs = lax.convert_element_type(obs * 255.0, jnp.int32) & 255
        q_hat = lax.convert_element_type(hat * 255.0, jnp.int32) & 255
        res = jnp.where(q_obs == q_hat, 0.0, res)

    if needs_col_mask:
        # Ragged feature tail: zero out-of-range lanes before the reduction.
        col = lax.broadcasted_iota(jnp.int32, (1, tile_d), 1) + k * tile_d
        res = jnp.where(col < feat_dim, res, 0.0)

    sq = res * res

    if single_feat_step:
        # One feature step per row tile: reduce and store directly.
        out_ref[...] = 0.5 * jnp.sum(sq, axis=-1, keepdims=True)
    else:
        @pl.when(k == 0)
        def _():
            acc_ref[...] = jnp.zeros_like(acc_ref)

        # Fold lane groups with pure VPU adds (static vreg-column slices);
        # the single cross-lane reduce happens once per row tile below.
        part = sq[:, 0:_LANE]
        for g in range(1, tile_d // _LANE):
            part = part + sq[:, g * _LANE:(g + 1) * _LANE]
        acc_ref[...] += part

        @pl.when(k == pl.num_programs(1) - 1)
        def _():
            out_ref[...] = 0.5 * jnp.sum(acc_ref[...], axis=-1, keepdims=True)


def mse_loss(obs_hat, obs, *, is_proprio, reduce=True,
             max_tile_rows=_MAX_TILE_ROWS):
    assert obs_hat.shape == obs.shape
    assert obs.ndim >= 3, "expects at least (B, T, feature...)"
    B, T = obs.shape[0], obs.shape[1]
    D = 1
    for s in obs.shape[2:]:
        D *= int(s)
    N = B * T

    # Free metadata reshapes -- no padding, no extra HBM round-trips.
    hat2 = obs_hat.reshape(N, D)
    obs2 = obs.reshape(N, D)

    itemsize = jnp.dtype(obs.dtype).itemsize
    tile_d = _choose_tile_d(D)
    tile_rows = _choose_tile_rows(N, tile_d, itemsize, max_tile_rows)
    grid = (pl.cdiv(N, tile_rows), pl.cdiv(D, tile_d))
    needs_col_mask = (D % tile_d) != 0
    single_feat_step = grid[1] == 1

    kernel = functools.partial(
        _mse_loss_kernel,
        is_proprio=is_proprio, feat_dim=D, tile_d=tile_d,
        needs_col_mask=needs_col_mask, single_feat_step=single_feat_step)

    per_row = pl.pallas_call(
        kernel,
        out_shape=jax.ShapeDtypeStruct((N, 1), jnp.float32),
        grid=grid,
        in_specs=[
            pl.BlockSpec((tile_rows, tile_d), lambda i, k: (i, k)),
            pl.BlockSpec((tile_rows, tile_d), lambda i, k: (i, k)),
        ],
        out_specs=pl.BlockSpec((tile_rows, 1), lambda i, k: (i, 0)),
        scratch_shapes=[pltpu.VMEM((tile_rows, _LANE), jnp.float32)],
        compiler_params=pltpu.CompilerParams(
            dimension_semantics=("parallel", "arbitrary"),
            vmem_limit_bytes=48 * 1024 * 1024,
        ),
    )(hat2, obs2)

    loss = per_row.reshape(B, T, 1)
    return jnp.mean(loss) if reduce else loss


def _reference(obs_hat, obs, *, is_proprio, reduce=True):
    obs_hat32 = obs_hat.astype(jnp.float32)
    obs32 = obs.astype(jnp.float32)
    if is_proprio:
        res = obs_hat32 - obs32
    else:
        to_u8 = lambda x: (lax.convert_element_type(x * 255.0, jnp.int32) & 255)
        res = jnp.where(to_u8(obs32) == to_u8(obs_hat32),
                        jnp.zeros_like(obs32), obs_hat32 - obs32)
    loss = 0.5 * jnp.square(res).reshape(obs.shape[0], obs.shape[1], -1)
    loss = jnp.sum(loss, axis=-1, keepdims=True)
    return jnp.mean(loss) if reduce else loss


if __name__ == "__main__":
    key = jax.random.PRNGKey(0)
    k1, k2, k3, k4, k5, k6 = jax.random.split(key, 6)

    ok = True

    # --- Pixel observations: (B, T, C, H, W) in [0, 1]. --------------------
    B, T, C, H, W = 2, 4, 3, 16, 16
    obs_img = jax.random.uniform(k1, (B, T, C, H, W), jnp.float32)
    obs_hat_img = jnp.clip(
        obs_img + 0.002 * jax.random.normal(k2, obs_img.shape, jnp.float32),
        0.0, 1.0)

    out = jax.block_until_ready(
        mse_loss(obs_hat_img, obs_img, is_proprio=False, reduce=True))
    ref = _reference(obs_hat_img, obs_img, is_proprio=False, reduce=True)
    ok &= bool(jnp.allclose(out, ref, rtol=1e-5, atol=1e-5))

    out_nr = jax.block_until_ready(
        mse_loss(obs_hat_img, obs_img, is_proprio=False, reduce=False))
    ref_nr = _reference(obs_hat_img, obs_img, is_proprio=False, reduce=False)
    ok &= out_nr.shape == (B, T, 1)
    ok &= bool(jnp.allclose(out_nr, ref_nr, rtol=1e-5, atol=1e-5))

    # --- Proprio observations: (B, T, D). D=32 exercises the block-equals- ---
    # --- full-feature-dim path (lane dim < 128, single feature step).      ---
    Dp = 32
    obs_pro = jax.random.normal(k3, (B, T, Dp), jnp.float32)
    obs_hat_pro = obs_pro + 0.1 * jax.random.normal(k4, obs_pro.shape,
                                                    jnp.float32)

    out_p = jax.block_until_ready(
        mse_loss(obs_hat_pro, obs_pro, is_proprio=True, reduce=True))
    ref_p = _reference(obs_hat_pro, obs_pro, is_proprio=True, reduce=True)
    ok &= bool(jnp.allclose(out_p, ref_p, rtol=1e-5, atol=1e-5))

    # bf16 inputs (dtype-aware tiling path; kernel upcasts to f32 internally).
    obs_pro_bf = obs_pro.astype(jnp.bfloat16)
    obs_hat_pro_bf = obs_hat_pro.astype(jnp.bfloat16)
    out_pb = jax.block_until_ready(
        mse_loss(obs_hat_pro_bf, obs_pro_bf, is_proprio=True, reduce=True))
    ref_pb = _reference(obs_hat_pro_bf, obs_pro_bf, is_proprio=True,
                        reduce=True)
    ok &= bool(jnp.allclose(out_pb, ref_pb, rtol=1e-5, atol=1e-5))

    # --- Larger pixel case: multi-step grid on BOTH axes, no padding. ------
    # N = 10 rows (ragged last row block, clipped on writeback);
    # D = 3*48*48 = 6912 > 4096 -> divisor-aware tile_d = 3456 (exact, no mask).
    B2, T2, C2, H2, W2 = 2, 5, 3, 48, 48
    obs_big = jax.random.uniform(k5, (B2, T2, C2, H2, W2), jnp.float32)
    obs_hat_big = jnp.clip(
        obs_big + 0.002 * jax.random.normal(k6, obs_big.shape, jnp.float32),
        0.0, 1.0)

    out_b = jax.block_until_ready(
        mse_loss(obs_hat_big, obs_big, is_proprio=False, reduce=False,
                 max_tile_rows=8))
    ref_b = _reference(obs_hat_big, obs_big, is_proprio=False, reduce=False)
    ok &= out_b.shape == (B2, T2, 1)
    ok &= bool(jnp.allclose(out_b, ref_b, rtol=1e-5, atol=1e-5))

    out_bm = jax.block_until_ready(
        mse_loss(obs_hat_big, obs_big, is_proprio=False, reduce=True,
                 max_tile_rows=8))
    ref_bm = _reference(obs_hat_big, obs_big, is_proprio=False, reduce=True)
    ok &= bool(jnp.allclose(out_bm, ref_bm, rtol=1e-5, atol=1e-5))

    assert ok, "mismatch vs reference"
    print("KERNEL_OK")
</pallas_src>

<mosaic_0001>
module attributes {stable_mosaic.version = 11 : i64} {
  func.func @_mse_loss_kernel(%arg0: i32, %arg1: i32, %arg2: memref<8x768xf32, #tpu.memory_space<vmem>>, %arg3: memref<8x768xf32, #tpu.memory_space<vmem>>, %arg4: memref<8x1xf32, #tpu.memory_space<vmem>>, %arg5: memref<8x128xf32, #tpu.memory_space<vmem>>) attributes {dimension_semantics = [#tpu.dimension_semantics<parallel>, #tpu.dimension_semantics<arbitrary>], iteration_bounds = array<i64: 1, 1>, scalar_prefetch = 0 : i64, scratch_operands = 1 : i64, tpu.core_type = #tpu.core_type<tc>, window_params = [{transform_indices = @transform_0, window_bounds = array<i64: 8, 768>}, {transform_indices = @transform_1, window_bounds = array<i64: 8, 768>}, {transform_indices = @transform_2, window_bounds = array<i64: 8, 1>}]} {
    %c0 = arith.constant 0 : index
    %c0_0 = arith.constant 0 : index
    %0 = vector.load %arg2[%c0, %c0_0] : memref<8x768xf32, #tpu.memory_space<vmem>>, vector<8x768xf32>
    %c0_1 = arith.constant 0 : index
    %c0_2 = arith.constant 0 : index
    %1 = vector.load %arg3[%c0_1, %c0_2] : memref<8x768xf32, #tpu.memory_space<vmem>>, vector<8x768xf32>
    %2 = arith.subf %0, %1 : vector<8x768xf32>
    %cst = arith.constant 2.550000e+02 : f32
    %3 = vector.broadcast %cst : f32 to vector<8x768xf32>
    %4 = arith.mulf %1, %3 : vector<8x768xf32>
    %5 = arith.fptosi %4 : vector<8x768xf32> to vector<8x768xi32>
    %c255_i32 = arith.constant 255 : i32
    %6 = vector.broadcast %c255_i32 : i32 to vector<8x768xi32>
    %7 = arith.andi %5, %6 : vector<8x768xi32>
    %cst_3 = arith.constant 2.550000e+02 : f32
    %8 = vector.broadcast %cst_3 : f32 to vector<8x768xf32>
    %9 = arith.mulf %0, %8 : vector<8x768xf32>
    %10 = arith.fptosi %9 : vector<8x768xf32> to vector<8x768xi32>
    %c255_i32_4 = arith.constant 255 : i32
    %11 = vector.broadcast %c255_i32_4 : i32 to vector<8x768xi32>
    %12 = arith.andi %10, %11 : vector<8x768xi32>
    %13 = arith.cmpi eq, %7, %12 : vector<8x768xi32>
    %cst_5 = arith.constant 0.000000e+00 : f32
    %14 = vector.broadcast %cst_5 : f32 to vector<8x768xf32>
    %15 = arith.select %13, %14, %2 : vector<8x768xi1>, vector<8x768xf32>
    %16 = arith.mulf %15, %15 : vector<8x768xf32>
    %cst_6 = arith.constant dense<0.000000e+00> : vector<8xf32>
    %17 = vector.multi_reduction <add>, %16, %cst_6 [1] : vector<8x768xf32> to vector<8xf32>
    %18 = vector.shape_cast %17 : vector<8xf32> to vector<8x1xf32>
    %cst_7 = arith.constant 5.000000e-01 : f32
    %19 = vector.broadcast %cst_7 : f32 to vector<8x1xf32>
    %20 = arith.mulf %19, %18 : vector<8x1xf32>
    %c0_8 = arith.constant 0 : index
    %c0_9 = arith.constant 0 : index
    %21 = vector.load %arg4[%c0_8, %c0_9] : memref<8x1xf32, #tpu.memory_space<vmem>>, vector<8x1xf32>
    tpu.vector_store %arg4[%c0_8, %c0_9], %20 {strides = array<i32>} : memref<8x1xf32, #tpu.memory_space<vmem>>, vector<8x1xf32>,
    return
  }
  func.func @transform_0(%arg0: i32, %arg1: i32) -> (i32, i32) {
    %c0_i32 = arith.constant 0 : i32
    return %arg0, %arg1 : i32, i32
  }
  func.func @transform_1(%arg0: i32, %arg1: i32) -> (i32, i32) {
    %c0_i32 = arith.constant 0 : i32
    return %arg0, %arg1 : i32, i32
  }
  func.func @transform_2(%arg0: i32, %arg1: i32) -> (i32, i32) {
    %c0_i32 = arith.constant 0 : i32
    %c0_i32_0 = arith.constant 0 : i32
    return %arg0, %c0_i32 : i32, i32
  }
}

</mosaic_0001>

<bundles_post_ra>
// kernel: tpu_custom_call.1
= control target key start
LH: loop header
LB: loop body
LE: loop exit
PB: predicated region body
PF: predicated region fallthrough
CT: control target
= control target key end

     0   :  { %7 = vsyncpa [#allocation4], 0  ;;  %s360_s0 = inlined_call_operand.hbm [shape: f32[8,768], index: 0, kind: input, shape index: {}]   ;;  %s361_s1 = inlined_call_operand.hbm [shape: f32[8,768], index: 1, kind: input, shape index: {}]   ;;  %s362_s2 = inlined_call_operand.vmem [shape: f32[8,1], index: 2, kind: output, shape index: {}]  }
   0x1   :  { %s14_s11 = sshll.u32 %s360_s0, 4  ;;  %s15_s11 = int_to_ptr.hbm [resolvable:$true] %s14_s11 }
   0x2   :  { %8 = vsyncpa [#allocation6], 0  ;;  %s241_s12 = smov [#allocation3]   ;;  %s25_s16 = sshll.u32 %s361_s1, 4  ;;  %s26_s16 = int_to_ptr.hbm [resolvable:$true] %s25_s16 }
   0x3   :  { %s16_s13 = sshll.u32 %s241_s12, 4  ;;  %s242_s17 = smov [#allocation5]   ;;  %s17_s13 = int_to_ptr.vmem [resolvable:$true] %s16_s13 }
   0x4   :  { %19 = dma.hbm_to_vmem [thread:$0]  %s15_s11, 768, %s17_s13, [#allocation4]  }
   0x5   :  { %s27_s18 = sshll.u32 %s242_s17, 4  ;;  %s28_s18 = int_to_ptr.vmem [resolvable:$true] %s27_s18 }
   0x6   :  { %30 = dma.hbm_to_vmem [thread:$0]  %s26_s16, 768, %s28_s18, [#allocation6]  }
   0x7   :  { %237 = dma.done.wait [#allocation4], 768  }
   0x8   :  { %238 = vsyncadd [#allocation4], 4294966528 }
   0x9   :  { %239 = dma.done.wait [#allocation6], 768  }
   0xa   :  { %240 = vsyncadd [#allocation6], 4294966528  ;;  %v264_v0 = vld [vmem:[#allocation3] sm:$0xff]  ;;  %v266_v1 = vld [vmem:[#allocation3 + $0x8] sm:$0xff] }
   0xb   :  { %v268_v2 = vld [vmem:[#allocation3 + $0x10] sm:$0xff]  ;;  %v270_v3 = vld [vmem:[#allocation3 + $0x18] sm:$0xff]  ;;  %v272_v4 = vld [vmem:[#allocation3 + $0x20] sm:$0xff]  ;;  %v277_v6 = vmul.f32 255.0, %v264_v0  ;;  %v286_v10 = vmul.f32 255.0, %v266_v1 }
   0xc   :  { %v274_v5 = vld [vmem:[#allocation3 + $0x28] sm:$0xff]  ;;  %v279_v7 = vld [vmem:[#allocation5] sm:$0xff]  ;;  %v281_v8 = vld [vmem:[#allocation5 + $0x8] sm:$0xff]  ;;  %v289_v11 = vmul.f32 255.0, %v268_v2  ;;  %v292_v12 = vmul.f32 255.0, %v270_v3  ;;  %v304_v18 = vmul.f32 255.0, %v272_v4 }
   0xd   :  { %v283_v9 = vld [vmem:[#allocation5 + $0x10] sm:$0xff]  ;;  %v294_v13 = vld [vmem:[#allocation5 + $0x18] sm:$0xff]  ;;  %v296_v14 = vld [vmem:[#allocation5 + $0x20] sm:$0xff]  ;;  %v51_v16 = vsub.f32 %v264_v0, %v279_v7  ;;  %v57_v17 = vmul.f32 255.0, %v279_v7  ;;  %v307_v19 = vmul.f32 255.0, %v274_v5  ;;  %v52_v20 = vsub.f32 %v266_v1, %v281_v8 }
   0xe   :  { %v298_v15 = vld [vmem:[#allocation5 + $0x28] sm:$0xff]  ;;  %v53_v21 = vsub.f32 %v268_v2, %v283_v9  ;;  %v54_v22 = vsub.f32 %v270_v3, %v294_v13  ;;  %v58_v23 = vmul.f32 255.0, %v281_v8  ;;  %v59_v24 = vmul.f32 255.0, %v283_v9 }
   0xf   :  { %v60_v25 = vmul.f32 255.0, %v294_v13  ;;  %v61_v26 = vmul.f32 255.0, %v296_v14  ;;  %v62_v27 = vmul.f32 255.0, %v298_v15  ;;  %vm127_vm0 = vcmp.lt.s32.totalorder %v57_v17, 0 }
  0x10   :  { %v128_v28 = vceil.f32 %v57_v17  ;;  %v129_v29 = vfloor.f32 %v57_v17  ;;  %vm132_vm1 = vcmp.lt.s32.totalorder %v58_v23, 0  ;;  %v133_v30 = vceil.f32 %v58_v23 }
  0x11   :  { %v134_v31 = vfloor.f32 %v58_v23  ;;  %vm137_vm2 = vcmp.lt.s32.totalorder %v59_v24, 0  ;;  %v138_v32 = vceil.f32 %v59_v24  ;;  %v139_v34 = vfloor.f32 %v59_v24 }
  0x12   :  { %v130_v33 = vsel %vm127_vm0, %v128_v28, %v129_v29  ;;  %vm142_vm3 = vcmp.lt.s32.totalorder %v60_v25, 0  ;;  %v143_v35 = vceil.f32 %v60_v25  ;;  %v144_v38 = vfloor.f32 %v60_v25 }
  0x13   :  { %v131_v36 = vcvt.f32.s32 %v130_v33  ;;  %v135_v37 = vsel %vm132_vm1, %v133_v30, %v134_v31  ;;  %vm147_vm4 = vcmp.lt.s32.totalorder %v61_v26, 0  ;;  %v140_v40 = vsel %vm137_vm2, %v138_v32, %v139_v34 }
  0x14   :  { %v136_v39 = vcvt.f32.s32 %v135_v37  ;;  %v148_v41 = vceil.f32 %v61_v26  ;;  %v149_v42 = vfloor.f32 %v61_v26  ;;  %v141_v43 = vcvt.f32.s32 %v140_v40 }
  0x15   :  { %v145_v44 = vsel %vm142_vm3, %v143_v35, %v144_v38  ;;  %vm152_vm5 = vcmp.lt.s32.totalorder %v62_v27, 0  ;;  %v153_v45 = vceil.f32 %v62_v27  ;;  %v55_v46 = vsub.f32 %v272_v4, %v296_v14 }
  0x16   :  { %v146_v47 = vcvt.f32.s32 %v145_v44  ;;  %v150_v48 = vsel %vm147_vm4, %v148_v41, %v149_v42  ;;  %v154_v49 = vfloor.f32 %v62_v27  ;;  %v56_v50 = vsub.f32 %v274_v5, %v298_v15 }
  0x17   :  { %v151_v51 = vcvt.f32.s32 %v150_v48  ;;  %v69_v52 = vand.u32 255, %v131_v36  ;;  %vm157_vm6 = vcmp.lt.s32.totalorder %v277_v6, 0  ;;  %v70_v54 = vand.u32 255, %v136_v39 }
  0x18   :  { %v155_v53 = vsel %vm152_vm5, %v153_v45, %v154_v49  ;;  %v158_v55 = vceil.f32 %v277_v6  ;;  %v159_v56 = vfloor.f32 %v277_v6  ;;  %v71_v57 = vand.u32 255, %v141_v43 }
  0x19   :  { %v72_v58 = vand.u32 255, %v146_v47  ;;  %vm162_vm7 = vcmp.lt.s32.totalorder %v286_v10, 0  ;;  %v163_v59 = vceil.f32 %v286_v10  ;;  %v164_v61 = vfloor.f32 %v286_v10 }
  0x1a   :  { %v160_v60 = vsel %vm157_vm6, %v158_v55, %v159_v56  ;;  %vm167_vm8 = vcmp.lt.s32.totalorder %v289_v11, 0  ;;  %v168_v62 = vceil.f32 %v289_v11  ;;  %v156_v63 = vcvt.f32.s32 %v155_v53 }
  0x1b   :  { %v161_v5 = vcvt.f32.s32 %v160_v60  ;;  %v169_v15 = vfloor.f32 %v289_v11  ;;  %vm172_vm9 = vcmp.lt.s32.totalorder %v292_v12, 0  ;;  %v165_v6 = vsel %vm162_vm7, %v163_v59, %v164_v61 }
  0x1c   :  { %v173_v17 = vceil.f32 %v292_v12  ;;  %v174_v23 = vfloor.f32 %v292_v12  ;;  %vm177_vm10 = vcmp.lt.s32.totalorder %v304_v18, 0  ;;  %v166_v24 = vcvt.f32.s32 %v165_v6 }
  0x1d   :  { %v170_v25 = vsel %vm167_vm8, %v168_v62, %v169_v15  ;;  %v178_v10 = vceil.f32 %v304_v18  ;;  %v179_v26 = vfloor.f32 %v304_v18  ;;  %vm182_vm11 = vcmp.lt.s32.totalorder %v307_v19, 0 }
  0x1e   :  { %v171_v27 = vcvt.f32.s32 %v170_v25  ;;  %v175_v28 = vsel %vm172_vm9, %v173_v17, %v174_v23  ;;  %v183_v11 = vceil.f32 %v307_v19  ;;  %v184_v31 = vfloor.f32 %v307_v19 }
  0x1f   :  { %v176_v29 = vcvt.f32.s32 %v175_v28  ;;  %v180_v30 = vsel %vm177_vm10, %v178_v10, %v179_v26  ;;  %v87_v32 = vand.u32 255, %v161_v5  ;;  %v73_v12 = vand.u32 255, %v151_v51 }
  0x20   :  { %v181_v33 = vcvt.f32.s32 %v180_v30  ;;  %v88_v34 = vand.u32 255, %v166_v24  ;;  %v89_v35 = vand.u32 255, %v171_v27  ;;  %v74_v36 = vand.u32 255, %v156_v63 }
  0x21   :  { %v185_v37 = vsel %vm182_vm11, %v183_v11, %v184_v31  ;;  %v90_v38 = vand.u32 255, %v176_v29  ;;  %vm93_vm12 = vcmp.eq.s32.totalorder %v69_v52, %v87_v32  ;;  %vm119_vm2 = vcmask 7168  }
  0x22   :  { %v186_v18 = vcvt.f32.s32 %v185_v37  ;;  %v91_v39 = vand.u32 255, %v181_v33  ;;  %vm94_vm13 = vcmp.eq.s32.totalorder %v70_v54, %v88_v34  ;;  %vm95_vm14 = vcmp.eq.s32.totalorder %v71_v57, %v89_v35 }
  0x23   :  { %vm96_vm15 = vcmp.eq.s32.totalorder %v72_v58, %v90_v38  ;;  %v99_v40 = vsel %vm93_vm12, 0.0, %v51_v16  ;;  %v100_v19 = vsel %vm94_vm13, 0.0, %v52_v20  ;;  %v101_v41 = vsel %vm95_vm14, 0.0, %v53_v21 }
  0x24   :  { %v92_v42 = vand.u32 255, %v186_v18  ;;  %vm97_vm0 = vcmp.eq.s32.totalorder %v73_v12, %v91_v39  ;;  %v102_v43 = vsel %vm96_vm15, 0.0, %v54_v22  ;;  %v105_v44 = vmul.f32 %v99_v40, %v99_v40 }
  0x25   :  { %v106_v45 = vmul.f32 %v100_v19, %v100_v19  ;;  %v107_v47 = vmul.f32 %v101_v41, %v101_v41  ;;  %v103_v0 = vsel %vm97_vm0, 0.0, %v55_v46  ;;  %v108_v1 = vmul.f32 %v102_v43, %v102_v43 }
  0x26   :  { %vm98_vm1 = vcmp.eq.s32.totalorder %v74_v36, %v92_v42  ;;  %v109_v16 = vmul.f32 %v103_v0, %v103_v0 }
  0x27   :  { %v111_v7 = vadd.f32 %v106_v45, %v105_v44  ;;  %v104_v8 = vsel %vm98_vm1, 0.0, %v56_v50 }
  0x28   :  { %v110_v9 = vmul.f32 %v104_v8, %v104_v8 }
  0x29   :  { %v112_v2 = vadd.f32 %v111_v7, %v107_v47 }
  0x2b   :  { %v113_v20 = vadd.f32 %v112_v2, %v108_v1 }
  0x2d   :  { %v114_v21 = vadd.f32 %v113_v20, %v109_v16 }
  0x2f   :  { %v115_v48 = vadd.f32 %v114_v21, %v110_v9 }
  0x31   :  { %116 = vadd.xlane.f32.xlu0 %v115_v48 }
  0xa4   :  { %v117_v3 = vpop.xlane.xlu0 %116 }
  0xa5   :  { %v118_v13 = vmul.f32 0.5, %v117_v3 }
  0xa7   :  { %120 = vst.msk [vmem:[%s362_s2] sm:$0xff] %vm119_vm2, %v118_v13 }
  0xa8   :  { %125 = vsyncpa [#allocation4], 1 }
  0xa9   :  { %126 = vsyncpa [#allocation6], 1 }

</bundles_post_ra>
